<compile_context>
chip_gen: v7x
topology: tpu7x:2x2x1
jax: 0.10.0
libtpu: 0.0.40
codegen_flags: <defaults>
</compile_context>

<pallas_src>
import jax
import jax.numpy as jnp
from jax import lax
from jax.experimental import pallas as pl
from jax.experimental.pallas import tpu as pltpu


def _round_up(x, m):
    return (x + m - 1) // m * m


def _pick_tile(dim, preferred, gran=128):
    """Tile size for a lane dimension.

    Prefer an exact divisor of `dim` that is a multiple of `gran` (so the
    weight never needs padding); if `dim` fits in one block, use the full dim
    (exempt from the (8,128) rule).  Only when `dim` is larger than one block
    AND not a multiple of `gran` (rare for vocab / enc_dim) do we fall back to
    padding.  Returns (tile, padded_dim)."""
    if dim <= preferred:
        return dim, dim                                # one full block, no pad
    if dim % gran == 0:
        t = max(gran, (preferred // gran) * gran)
        while dim % t != 0:
            t -= gran
        return t, dim                                  # exact divisor, no pad
    t = max(gran, min((preferred // gran) * gran, _round_up(dim, gran)))
    return t, _round_up(dim, t)                        # rare padding fallback


def _linear_kernel_fullk(x_ref, w_ref, b_ref, o_ref):
    # x: (tm, K), w: (tn, K)  -- W kept in nn.Linear's (out, in) layout.
    acc = lax.dot_general(
        x_ref[...], w_ref[...],
        dimension_numbers=(((1,), (1,)), ((), ())),
        preferred_element_type=jnp.float32)
    o_ref[...] = (acc + b_ref[...]).astype(o_ref.dtype)


def _linear_kernel_ktiled(x_ref, w_ref, b_ref, o_ref, acc_ref):
    k = pl.program_id(2)

    @pl.when(k == 0)
    def _():
        acc_ref[...] = jnp.zeros_like(acc_ref)

    acc_ref[...] += lax.dot_general(
        x_ref[...], w_ref[...],
        dimension_numbers=(((1,), (1,)), ((), ())),
        preferred_element_type=jnp.float32)

    @pl.when(k == pl.num_programs(2) - 1)
    def _():
        o_ref[...] = (acc_ref[...] + b_ref[...]).astype(o_ref.dtype)


def prepare_decoder_params(weight, bias, compute_dtype=jnp.bfloat16):
    """Cast the decoder params ONCE (at model init, outside the per-step jit)
    so linear_decoder never spends an extra HBM pass casting W per call."""
    w = weight if compute_dtype is None else weight.astype(compute_dtype)
    return w, bias.astype(jnp.float32)


def linear_decoder(enc_outs, weight, bias, *, tm=512, tn=512, tk=2048,
                   compute_dtype=jnp.bfloat16, out_dtype=None,
                   vmem_budget_bytes=40 * 1024 * 1024):
    """y = enc_outs @ W^T + b  (nn.Linear forward).

    enc_outs: (..., enc_dim); weight: (out_dim, enc_dim); bias: (out_dim,).
    Pass `weight` already cast to `compute_dtype` (see prepare_decoder_params)
    so no per-call HBM pass over W is needed.  compute_dtype=None keeps the
    input dtype (exact f32 semantics of the PyTorch module).
    """
    orig_shape = enc_outs.shape
    K = orig_shape[-1]
    N, Kw = weight.shape
    assert Kw == K, (weight.shape, K)
    if out_dtype is None:
        out_dtype = enc_outs.dtype

    x2d = enc_outs.reshape(-1, K)
    M = x2d.shape[0]

    cd = jnp.dtype(compute_dtype) if compute_dtype is not None else x2d.dtype
    if x2d.dtype != cd:
        x2d = x2d.astype(cd)           # activations: cheap vs the W stream
    if weight.dtype != cd:
        weight = weight.astype(cd)     # ideally a no-op (pre-cast at init)
    xb = wb = cd.itemsize
    ob = jnp.dtype(out_dtype).itemsize

    # Sublane granularity of the packed compute dtype (f32 -> 8, bf16 -> 16).
    row_gran = 8 * max(1, 4 // xb)

    # --- N tile: exact divisor of N (multiple of 128) or the full dim. ---
    tn_eff, N_pad = _pick_tile(N, tn, 128)

    # --- M tile: the only axis we routinely pad (x/out only, never W). ---
    tm_eff = min(tm, _round_up(M, row_gran))
    tm_eff = _round_up(max(tm_eff, row_gran), row_gran)
    M_pad = _round_up(M, tm_eff)

    bias2d = bias.astype(jnp.float32).reshape(1, N)
    if N_pad != N:                       # rare: out_dim > tn and not 128-mult.
        weight = jnp.pad(weight, ((0, N_pad - N), (0, 0)))
        bias2d = jnp.pad(bias2d, ((0, 0), (0, N_pad - N)))
    if M_pad != M:
        x2d = jnp.pad(x2d, ((0, M_pad - M), (0, 0)))

    vmem_limit = 48 * 1024 * 1024        # < v7x 64 MiB physical per TC

    # Full-K working-set estimate (double-buffered x / W / out + bias).
    vmem_fullk = (2 * tm_eff * K * xb + 2 * tn_eff * K * wb
                  + 2 * tm_eff * tn_eff * ob + 2 * tn_eff * 4)

    if vmem_fullk <= vmem_budget_bytes:
        # -------- no K grid axis: MXU-internal accumulation, no acc RMW ----
        grid = (M_pad // tm_eff, N_pad // tn_eff)
        cost = pl.CostEstimate(
            flops=2 * M_pad * N_pad * K, transcendentals=0,
            bytes_accessed=(M_pad * K * xb            # x fetched once / M tile
                            + grid[0] * N_pad * K * wb  # W re-streamed per M tile
                            + M_pad * N_pad * ob + N_pad * 4))
        out2d = pl.pallas_call(
            _linear_kernel_fullk,
            out_shape=jax.ShapeDtypeStruct((M_pad, N_pad), out_dtype),
            grid_spec=pltpu.PrefetchScalarGridSpec(
                num_scalar_prefetch=0,
                grid=grid,
                in_specs=[
                    pl.BlockSpec((tm_eff, K), lambda i, j: (i, 0)),   # x strip
                    pl.BlockSpec((tn_eff, K), lambda i, j: (j, 0)),   # W rows
                    pl.BlockSpec((1, tn_eff), lambda i, j: (0, j)),   # bias
                ],
                out_specs=pl.BlockSpec((tm_eff, tn_eff), lambda i, j: (i, j)),
            ),
            compiler_params=pltpu.CompilerParams(
                dimension_semantics=("parallel", "parallel"),
                vmem_limit_bytes=vmem_limit),
            cost_estimate=cost,
        )(x2d, weight, bias2d)
    else:
        # -------- fallback: canonical 3-axis tiled matmul (large K) --------
        tk_eff, K_pad = _pick_tile(K, tk, 128)
        if K_pad != K:                   # rare: enc_dim not a 128 multiple
            x2d = jnp.pad(x2d, ((0, 0), (0, K_pad - K)))
            weight = jnp.pad(weight, ((0, 0), (0, K_pad - K)))
        grid = (M_pad // tm_eff, N_pad // tn_eff, K_pad // tk_eff)
        cost = pl.CostEstimate(
            flops=2 * M_pad * N_pad * K_pad, transcendentals=0,
            bytes_accessed=(grid[1] * M_pad * K_pad * xb
                            + grid[0] * N_pad * K_pad * wb
                            + M_pad * N_pad * ob + N_pad * 4))
        out2d = pl.pallas_call(
            _linear_kernel_ktiled,
            out_shape=jax.ShapeDtypeStruct((M_pad, N_pad), out_dtype),
            grid_spec=pltpu.PrefetchScalarGridSpec(
                num_scalar_prefetch=0,
                grid=grid,
                in_specs=[
                    pl.BlockSpec((tm_eff, tk_eff), lambda i, j, k: (i, k)),
                    pl.BlockSpec((tn_eff, tk_eff), lambda i, j, k: (j, k)),
                    pl.BlockSpec((1, tn_eff), lambda i, j, k: (0, j)),
                ],
                out_specs=pl.BlockSpec((tm_eff, tn_eff), lambda i, j, k: (i, j)),
                scratch_shapes=[pltpu.VMEM((tm_eff, tn_eff), jnp.float32)],
            ),
            compiler_params=pltpu.CompilerParams(
                dimension_semantics=("parallel", "parallel", "arbitrary"),
                vmem_limit_bytes=vmem_limit),
            cost_estimate=cost,
        )(x2d, weight, bias2d)

    out = out2d[:M, :N] if (M_pad != M or N_pad != N) else out2d
    return out.reshape(*orig_shape[:-1], N)


def linear_decoder_ref(enc_outs, weight, bias):
    return jnp.einsum("...k,nk->...n", enc_outs, weight) + bias


if __name__ == "__main__":
    key = jax.random.PRNGKey(0)
    k_x, k_w, k_b, k_x2 = jax.random.split(key, 4)

    # Small demo shapes consistent with the module.
    batch, seq, enc_dim, out_dim = 2, 8, 32, 64
    enc_outs = jax.random.normal(k_x, (batch, seq, enc_dim), dtype=jnp.float32)
    weight_f32 = jax.random.normal(k_w, (out_dim, enc_dim), dtype=jnp.float32) * 0.1
    bias_f32 = jax.random.normal(k_b, (out_dim,), dtype=jnp.float32) * 0.1

    # ---- default bf16-MXU path; W pre-cast ONCE at "init" ----
    weight_bf16, bias_prep = prepare_decoder_params(weight_f32, bias_f32)
    out = jax.block_until_ready(linear_decoder(enc_outs, weight_bf16, bias_prep))
    assert out.shape == (batch, seq, out_dim)
    ref_bf16 = (jnp.einsum("...k,nk->...n",
                           enc_outs.astype(jnp.bfloat16).astype(jnp.float32),
                           weight_bf16.astype(jnp.float32)) + bias_prep)
    assert jnp.allclose(out, ref_bf16, atol=1e-3, rtol=1e-3)

    # ---- exact f32 path + ragged batch*seq (exercises M padding) ----
    enc_outs2 = jax.random.normal(k_x2, (3, 5, enc_dim), dtype=jnp.float32)
    out2 = jax.block_until_ready(
        linear_decoder(enc_outs2, weight_f32, bias_f32, compute_dtype=None))
    ref2 = linear_decoder_ref(enc_outs2, weight_f32, bias_f32)
    assert out2.shape == (3, 5, out_dim)
    assert jnp.allclose(out2, ref2, atol=1e-4, rtol=1e-4)

    # ---- force the K-tiled fallback path (tiny VMEM budget) ----
    out3 = jax.block_until_ready(
        linear_decoder(enc_outs, weight_f32, bias_f32, compute_dtype=None,
                       vmem_budget_bytes=1))
    ref3 = linear_decoder_ref(enc_outs, weight_f32, bias_f32)
    assert jnp.allclose(out3, ref3, atol=1e-4, rtol=1e-4)

    print("KERNEL_OK")
</pallas_src>

<mosaic_0001>
module attributes {stable_mosaic.version = 11 : i64} {
  func.func @_linear_kernel_fullk(%arg0: i32, %arg1: i32, %arg2: memref<16x32xbf16, #tpu.memory_space<vmem>>, %arg3: memref<64x32xbf16, #tpu.memory_space<vmem>>, %arg4: memref<1x64xf32, #tpu.memory_space<vmem>>, %arg5: memref<16x64xf32, #tpu.memory_space<vmem>>) attributes {dimension_semantics = [#tpu.dimension_semantics<parallel>, #tpu.dimension_semantics<parallel>], iteration_bounds = array<i64: 1, 1>, scalar_prefetch = 0 : i64, scratch_operands = 0 : i64, tpu.core_type = #tpu.core_type<tc>, window_params = [{transform_indices = @transform_0, window_bounds = array<i64: 16, 32>}, {transform_indices = @transform_1, window_bounds = array<i64: 64, 32>}, {transform_indices = @transform_2, window_bounds = array<i64: 1, 64>}, {transform_indices = @transform_3, window_bounds = array<i64: 16, 64>}]} {
    %c0 = arith.constant 0 : index
    %c0_0 = arith.constant 0 : index
    %0 = vector.load %arg2[%c0, %c0_0] : memref<16x32xbf16, #tpu.memory_space<vmem>>, vector<16x32xbf16>
    %c0_1 = arith.constant 0 : index
    %c0_2 = arith.constant 0 : index
    %1 = vector.load %arg3[%c0_1, %c0_2] : memref<64x32xbf16, #tpu.memory_space<vmem>>, vector<64x32xbf16>
    %cst = arith.constant dense<0.000000e+00> : vector<16x64xf32>
    %2 = tpu.matmul %0, %1, %cst {dimension_numbers = #tpu.dot_dimension_numbers<[1], [1], [0], [0], [0, 0, 1, 0], [], []>} : vector<16x32xbf16>, vector<64x32xbf16>, vector<16x64xf32> -> vector<16x64xf32>
    %c0_3 = arith.constant 0 : index
    %c0_4 = arith.constant 0 : index
    %3 = vector.load %arg4[%c0_3, %c0_4] : memref<1x64xf32, #tpu.memory_space<vmem>>, vector<1x64xf32>
    %4 = vector.broadcast %3 : vector<1x64xf32> to vector<16x64xf32>
    %5 = arith.addf %2, %4 : vector<16x64xf32>
    %c0_5 = arith.constant 0 : index
    %c0_6 = arith.constant 0 : index
    %6 = vector.load %arg5[%c0_5, %c0_6] : memref<16x64xf32, #tpu.memory_space<vmem>>, vector<16x64xf32>
    tpu.vector_store %arg5[%c0_5, %c0_6], %5 {strides = array<i32>} : memref<16x64xf32, #tpu.memory_space<vmem>>, vector<16x64xf32>,
    return
  }
  func.func @transform_0(%arg0: i32, %arg1: i32) -> (i32, i32) {
    %c0_i32 = arith.constant 0 : i32
    %c0_i32_0 = arith.constant 0 : i32
    return %arg0, %c0_i32 : i32, i32
  }
  func.func @transform_1(%arg0: i32, %arg1: i32) -> (i32, i32) {
    %c0_i32 = arith.constant 0 : i32
    %c0_i32_0 = arith.constant 0 : i32
    return %arg1, %c0_i32 : i32, i32
  }
  func.func @transform_2(%arg0: i32, %arg1: i32) -> (i32, i32) {
    %c0_i32 = arith.constant 0 : i32
    %c0_i32_0 = arith.constant 0 : i32
    return %c0_i32, %arg1 : i32, i32
  }
  func.func @transform_3(%arg0: i32, %arg1: i32) -> (i32, i32) {
    %c0_i32 = arith.constant 0 : i32
    return %arg0, %arg1 : i32, i32
  }
}

</mosaic_0001>

<bundles_post_ra>
// kernel: tpu_custom_call.1
= control target key start
LH: loop header
LB: loop body
LE: loop exit
PB: predicated region body
PF: predicated region fallthrough
CT: control target
= control target key end

     0   :  { %v192_v1 = vmov 0.0   ;;  %vm58_vm0 = vcmask 261120   ;;  %vm193_vm1 = vmmov 0   ;;  %s252_s0 = inlined_call_operand.vmem [shape: bf16[16,32], index: 0, kind: input, shape index: {}]   ;;  %s253_s1 = inlined_call_operand.vmem [shape: bf16[64,32], index: 1, kind: input, shape index: {}]   ;;  %s254_s2 = inlined_call_operand.vmem [shape: f32[1,64], index: 2, kind: input, shape index: {}]   ;;  %s255_s3 = inlined_call_operand.hbm [shape: f32[16,64], index: 3, kind: output, shape index: {}]  }
   0x1   :  { %v163_v0 = vld [vmem:[%s253_s1] sm:$0xff]   ;;  %146 = vmatprep.subr.bf16.mxu0 %v192_v1  ;;  %v164_v3 = vld [vmem:[%s253_s1 + $0x8] sm:$0xff]   ;;  %154 = vmatprep.mubr.msk.bf16.mxu0 %vm193_vm1, %v192_v1 }
   0x2   :  { %v63_v2 = vsel %vm58_vm0, %v163_v0, 0 }
   0x3   :  { %147 = vmatpush3.bf16.xpose.msra.mxu0 %v63_v2 }
   0x4   :  { %148 = vmatprep.subr.bf16.mxu0 %v192_v1 }
   0x5   :  { %8 = vsyncpa [#allocation3], 0  ;;  %v66_v4 = vsel %vm58_vm0, %v164_v3, 0  ;;  %v165_v5 = vld [vmem:[%s253_s1 + $0x10] sm:$0xff]   ;;  %v166_v7 = vld [vmem:[%s253_s1 + $0x18] sm:$0xff]   ;;  %s194_s24 = smov [#allocation2]  }
   0x6   :  { %v69_v6 = vsel %vm58_vm0, %v165_v5, 0  ;;  %v72_v8 = vsel %vm58_vm0, %v166_v7, 0  ;;  %v167_v9 = vld [vmem:[%s252_s0] sm:$0xff]   ;;  %s123_s25 = sshll.u32 %s194_s24, 4  ;;  %vm115_vm2 = vcmask 523264   ;;  %s124_s25 = int_to_ptr.vmem [resolvable:$true] %s123_s25 }
   0x7   :  { %v134_v10 = vld [vmem:[%s254_s2] ss:$0 sm:$0xff]  ;;  %s168_s1 = scalar_lea.vmem %s124_s25, 256  ;;  %p173_p1 = scmp.lt.s32.totalorder %s124_s25, %s124_s25 }
   0x8   :  { %p169_p0 = scmp.ne.s32.totalorder %s124_s25, %s168_s1  ;;  %p174_p2 = scmp.lt.s32.totalorder %s168_s1, %s168_s1 }
   0xa   :  { %p175_p3 = por %p174_p2, %p173_p1 }
   0xb   :  { %149 = vmatpush3.bf16.xpose.msra.mxu0 %v66_v4 }
   0xc   :  { %150 = vmatprep.subr.bf16.mxu0 %v192_v1  ;;  %p176_p4 = pnand %p175_p3, %p169_p0 }
  0x13   :  { %151 = vmatpush3.bf16.xpose.msra.mxu0 %v69_v6 }
  0x14   :  { %152 = vmatprep.subr.bf16.mxu0 %v192_v1 }
  0x1b   :  { %153 = vmatpush3.bf16.xpose.msra.mxu0 %v72_v8 }
  0x22   :  { %155 = vmatmul.mubr.msk.bf16.vlgmr.msra.gmra.mrb[0].mxu0 %vm58_vm0, %v167_v9 }
  0xf5   :  { %v108_v11 = vpop.f32.mrb[0].mxu0 }
  0xf6   :  { %v109_v12 = vadd.f32 %v134_v10, %v108_v11  ;;  %v156_v13 = vpop.f32.mrb[1].mxu0 }
  0xf7   :  { %v111_v14 = vpop.f32.mrb[2].mxu0 }
  0xf8   :  { %116 = vst.msk [vmem:[#allocation2] sm:$0xff] %vm115_vm2, %v109_v12  ;;  %v112_v15 = vadd.f32 %v134_v10, %v111_v14  ;;  %v157_v16 = vpop.f32.mrb[3].mxu0 }
  0xfa   :  { %117 = vst.msk [vmem:[#allocation2 + $0x8] sm:$0xff] %vm115_vm2, %v112_v15 }
  0xfb   :  { %179 = shalt.err (!%p176_p4)
}
  0xfc   :  { %s180_s26 = scalar_lea.hbm %s255_s3, 256 }
  0xfd   :  { %p181_p5 = scmp.ne.s32.totalorder %s255_s3, %s180_s26  ;;  %p184_p6 = scmp.lt.u32.totalorder %s180_s26, %s255_s3 }
  0xff   :  { %p186_p7 = pnand %p184_p6, %p181_p5 }
 0x101   :  { %189 = shalt.err (!%p186_p7)
}
 0x102   :  { %s195_s4 = smov 128   ;;  %s196_s5 = smov 8  }
 0x103   :  { %129 = dma.vmem_to_hbm [thread:$0]  %s124_s25, 256, %s255_s3, [#allocation3], %s195_s4, %s195_s4, %s196_s5  }
 0x104   :  { %190 = dma.done.wait [#allocation3], 256  }
 0x105   :  { %191 = vsyncadd [#allocation3], 4294967040 }
 0x106   :  { %133 = vsyncpa [#allocation3], 1 }

</bundles_post_ra>
